<compile_context>
chip_gen: v7x
topology: tpu7x:2x2x1
jax: 0.10.0
libtpu: 0.0.40
codegen_flags: <defaults>
</compile_context>

<pallas_src>
import numpy as np
import jax
import jax.numpy as jnp
from jax.experimental import pallas as pl
from jax.experimental.pallas import tpu as pltpu

_LANES = 128
_SUBLANES = 8


def _round_up(x, m):
    return (x + m - 1) // m * m


def _make_fused_mlp_kernel(num_layers):
    """Kernel: o = relu(...relu(x @ W0 + b0)... @ W_{L-1} + b_{L-1})."""
    def kernel(*refs):
        x_ref = refs[0]
        o_ref = refs[-1]
        h = x_ref[...]                                    # (TB, r*F_in)
        for l in range(num_layers):
            w = refs[1 + 2 * l][...]                      # (r*F_in_l, r*F_out_l)
            b = refs[2 + 2 * l][...]                      # (1, r*F_out_l)
            h = jnp.dot(h, w, preferred_element_type=jnp.float32) + b
            h = jnp.maximum(h, 0.0)                       # ReLU epilogue in f32
        # TODO(synk): optional bf16 writeback (halves output HBM bytes) if the
        # consumer tolerates bf16 activations; kept f32 to match nn.Linear.
        o_ref[...] = h.astype(o_ref.dtype)
    return kernel


def gtheta_ec_reference(x, params):
    """Pure-JAX reference (same semantics as the PyTorch Sequential)."""
    out = x
    for (w_t, b) in params:
        out = jnp.maximum(out @ w_t + b, 0.0)
    return out


def gtheta_ec_forward(x, params, *, tb=None, block_budget_bytes=4 << 20,
                      xla_fallback_rows=512, force_pallas=False):
    """Fused forward pass of GThetaEC in a single pallas_call.

    params: list of (w_t, b) with w_t shaped (f_in, f_out) (pre-transposed)
            and b shaped (f_out,).
    tb:     optional batch-tile size in PACKED rows (rounded up to multiple of 8).
    """
    batch, f_in = x.shape
    num_layers = len(params)
    f_out_last = params[-1][0].shape[1]

    # Tiny problems: pallas dispatch + pipeline prologue dominate; XLA's fused
    # dot+relu wins.  Keep the kernel path for the large-batch regime.
    if not force_pallas and batch < xla_fallback_rows:
        return gtheta_ec_reference(x, params)

    # ---- lane-dense fold ---------------------------------------------------
    # Fold r batch rows into one 128-lane row so loads/stores/MXU are dense.
    widths = [f_in] + [w.shape[1] for (w, _) in params]
    max_w = max(widths)
    r = _LANES // max_w if (max_w < _LANES and _LANES % max_w == 0) else 1

    b_fold = _round_up(batch, r)
    if b_fold != batch:
        x = jnp.pad(x, ((0, b_fold - batch), (0, 0)))
    bp = b_fold // r                          # packed batch rows
    xp = x.reshape(bp, r * f_in)              # contiguous reshape -> free

    packed_params = []
    for (w_t, b) in params:
        fi, fo = w_t.shape
        if r == 1:
            packed_params.append((w_t, b.reshape(1, fo)))
        else:
            # Block-diagonal weight: r independent copies of W on the diagonal.
            w_blk = jnp.kron(jnp.eye(r, dtype=w_t.dtype), w_t)   # (r*fi, r*fo)
            b_blk = jnp.tile(b, r).reshape(1, r * fo)
            packed_params.append((w_blk, b_blk))
    in_w = r * f_in
    out_w = r * f_out_last

    # ---- batch tile (packed rows) -------------------------------------------
    # Target ~block_budget_bytes for one (input + output) block so the fixed
    # per-grid-step overhead is amortised, but keep >= 4 grid steps when the
    # batch allows it so both v7x TensorCores (and their DMA engines) get work.
    if tb is None:
        bytes_per_row = 4 * (in_w + out_w)                       # f32 in + out
        tb = block_budget_bytes // max(1, bytes_per_row)
        tb = min(tb, 1 << 14)
        tb = min(tb, _round_up(pl.cdiv(bp, 4), _SUBLANES))
    tb = max(_SUBLANES, _round_up(int(tb), _SUBLANES))

    b_pad = _round_up(bp, tb)
    if b_pad != bp:
        xp = jnp.pad(xp, ((0, b_pad - bp), (0, 0)))
    grid = (b_pad // tb,)

    # ---- VMEM budget / explicit scoped limit ---------------------------------
    # Double-buffered in+out blocks plus (double-buffered) resident weights.
    weight_bytes = sum(w.size + b.size for (w, b) in packed_params) * 4
    pipeline_bytes = 2 * tb * (in_w + out_w) * 4
    vmem_needed = pipeline_bytes + 2 * weight_bytes + (2 << 20)   # + headroom
    vmem_limit_bytes = int(min(max(vmem_needed, 32 << 20), 48 << 20))

    # ---- specs ---------------------------------------------------------------
    in_specs = [pl.BlockSpec((tb, in_w), lambda i: (i, 0))]
    flat_inputs = [xp]
    for (w_blk, b_blk) in packed_params:
        fi, fo = w_blk.shape
        # Weights / biases: same block every grid step -> stay resident in VMEM.
        # TODO(synk): pipeline_mode=pl.Buffered(1) would halve their footprint
        # for very wide configs; irrelevant at these sizes.
        in_specs.append(pl.BlockSpec((fi, fo), lambda i: (0, 0)))
        in_specs.append(pl.BlockSpec((1, fo), lambda i: (0, 0)))
        flat_inputs.append(w_blk)
        flat_inputs.append(b_blk)

    out = pl.pallas_call(
        _make_fused_mlp_kernel(num_layers),
        out_shape=jax.ShapeDtypeStruct((b_pad, out_w), jnp.float32),
        grid=grid,
        in_specs=in_specs,
        out_specs=pl.BlockSpec((tb, out_w), lambda i: (i, 0)),
        compiler_params=pltpu.CompilerParams(
            dimension_semantics=("parallel",),        # shard batch tiles across TCs
            vmem_limit_bytes=vmem_limit_bytes),
    )(*flat_inputs)

    # Undo tile padding, the lane fold, and batch padding.
    out = out[:bp].reshape(bp * r, f_out_last)[:batch]
    return out


def make_gtheta_params(key, num_features):
    """Init mimicking nn.Linear defaults (uniform +/- 1/sqrt(fan_in)).

    Weights are stored PRE-TRANSPOSED as (f_in, f_out) so the kernel never
    transposes on the XLU.
    """
    params = []
    for i in range(len(num_features) - 1):
        f_in, f_out = num_features[i], num_features[i + 1]
        key, kw, kb = jax.random.split(key, 3)
        bound = 1.0 / np.sqrt(f_in)
        w = jax.random.uniform(kw, (f_out, f_in), jnp.float32, -bound, bound)
        b = jax.random.uniform(kb, (f_out,), jnp.float32, -bound, bound)
        params.append((w.T, b))          # store as (f_in, f_out)
    return params


if __name__ == "__main__":
    key = jax.random.PRNGKey(0)

    def run_case(key, num_features, batch, **kw):
        key, kx, kp = jax.random.split(key, 3)
        x = jax.random.normal(kx, (batch, num_features[0]), jnp.float32)
        params = make_gtheta_params(kp, num_features)
        out = gtheta_ec_forward(x, params, force_pallas=True, **kw)
        out = jax.block_until_ready(out)
        ref = gtheta_ec_reference(x, params)
        np.testing.assert_allclose(np.asarray(out), np.asarray(ref),
                                   rtol=1e-5, atol=1e-5)
        return key

    # Default module config: one Linear(32,32)+ReLU; lane fold r=4 -> 128 lanes.
    key = run_case(key, [32, 32], batch=8)

    # Multi-layer, mixed widths: fold r=2, multi-step grid (exercises tiling,
    # fold padding and the fused layer chain).
    key = run_case(key, [32, 64, 32], batch=100)

    # Width that does not divide 128: r=1 fallback path.
    key = run_case(key, [96, 96], batch=24)

    print("KERNEL_OK")
</pallas_src>

<mosaic_0001>
module attributes {stable_mosaic.version = 11 : i64} {
  func.func @kernel(%arg0: i32, %arg1: memref<8x128xf32, #tpu.memory_space<vmem>>, %arg2: memref<128x128xf32, #tpu.memory_space<vmem>>, %arg3: memref<1x128xf32, #tpu.memory_space<vmem>>, %arg4: memref<8x128xf32, #tpu.memory_space<vmem>>) attributes {dimension_semantics = [#tpu.dimension_semantics<parallel>], iteration_bounds = array<i64: 1>, scalar_prefetch = 0 : i64, scratch_operands = 0 : i64, tpu.core_type = #tpu.core_type<tc>, window_params = [{transform_indices = @transform_0, window_bounds = array<i64: 8, 128>}, {pipeline_mode = #tpu.pipeline_mode<synchronous>, transform_indices = @transform_1, window_bounds = array<i64: 128, 128>}, {pipeline_mode = #tpu.pipeline_mode<synchronous>, transform_indices = @transform_2, window_bounds = array<i64: 1, 128>}, {transform_indices = @transform_3, window_bounds = array<i64: 8, 128>}]} {
    %c0 = arith.constant 0 : index
    %c0_0 = arith.constant 0 : index
    %0 = vector.load %arg1[%c0, %c0_0] : memref<8x128xf32, #tpu.memory_space<vmem>>, vector<8x128xf32>
    %c0_1 = arith.constant 0 : index
    %c0_2 = arith.constant 0 : index
    %1 = vector.load %arg2[%c0_1, %c0_2] : memref<128x128xf32, #tpu.memory_space<vmem>>, vector<128x128xf32>
    %c0_3 = arith.constant 0 : index
    %c0_4 = arith.constant 0 : index
    %2 = vector.load %arg3[%c0_3, %c0_4] : memref<1x128xf32, #tpu.memory_space<vmem>>, vector<1x128xf32>
    %cst = arith.constant dense<0.000000e+00> : vector<8x128xf32>
    %3 = tpu.matmul %0, %1, %cst {dimension_numbers = #tpu.dot_dimension_numbers<[1], [0], [0], [1], [0, 0, 1, 1], [], []>} : vector<8x128xf32>, vector<128x128xf32>, vector<8x128xf32> -> vector<8x128xf32>
    %4 = vector.broadcast %2 : vector<1x128xf32> to vector<8x128xf32>
    %5 = arith.addf %3, %4 : vector<8x128xf32>
    %cst_5 = arith.constant 0.000000e+00 : f32
    %6 = vector.broadcast %cst_5 : f32 to vector<8x128xf32>
    %7 = arith.maximumf %5, %6 : vector<8x128xf32>
    %c0_6 = arith.constant 0 : index
    %c0_7 = arith.constant 0 : index
    %8 = vector.load %arg4[%c0_6, %c0_7] : memref<8x128xf32, #tpu.memory_space<vmem>>, vector<8x128xf32>
    tpu.vector_store %arg4[%c0_6, %c0_7], %7 {strides = array<i32>} : memref<8x128xf32, #tpu.memory_space<vmem>>, vector<8x128xf32>,
    return
  }
  func.func @transform_0(%arg0: i32) -> (i32, i32) {
    %c0_i32 = arith.constant 0 : i32
    %c0_i32_0 = arith.constant 0 : i32
    return %arg0, %c0_i32 : i32, i32
  }
  func.func @transform_1(%arg0: i32) -> (i32, i32) {
    %c0_i32 = arith.constant 0 : i32
    %c0_i32_0 = arith.constant 0 : i32
    %c0_i32_1 = arith.constant 0 : i32
    return %c0_i32, %c0_i32_0 : i32, i32
  }
  func.func @transform_2(%arg0: i32) -> (i32, i32) {
    %c0_i32 = arith.constant 0 : i32
    %c0_i32_0 = arith.constant 0 : i32
    %c0_i32_1 = arith.constant 0 : i32
    return %c0_i32, %c0_i32_0 : i32, i32
  }
  func.func @transform_3(%arg0: i32) -> (i32, i32) {
    %c0_i32 = arith.constant 0 : i32
    %c0_i32_0 = arith.constant 0 : i32
    return %arg0, %c0_i32 : i32, i32
  }
}

</mosaic_0001>

<bundles_post_ra>
// kernel: tpu_custom_call.1
= control target key start
LH: loop header
LB: loop body
LE: loop exit
PB: predicated region body
PF: predicated region fallthrough
CT: control target
= control target key end

     0   :  { %8 = vsyncpa [#allocation3], 0  ;;  %s384_s0 = inlined_call_operand.hbm [shape: f32[8,128], index: 0, kind: input, shape index: {}]   ;;  %s385_s1 = inlined_call_operand.hbm [shape: f32[128,128], index: 1, kind: input, shape index: {}]   ;;  %s386_s2 = inlined_call_operand.vmem [shape: f32[1,128], index: 2, kind: input, shape index: {}]   ;;  %s387_s3 = inlined_call_operand.hbm [shape: f32[8,128], index: 3, kind: output, shape index: {}]  }
   0x1   :  { %9 = vsyncpa [#allocation6], 0 }
   0x2   :  { %10 = vsyncpa [#allocation4], 0  ;;  %s310_s12 = smov [#allocation2]   ;;  %s311_s14 = smov [#allocation5]  }
   0x3   :  { %s17_s13 = sshll.u32 %s310_s12, 4  ;;  %s26_s15 = sshll.u32 %s311_s14, 4  ;;  %s18_s13 = int_to_ptr.vmem [resolvable:$true] %s17_s13  ;;  %s338_s15 = int_to_ptr.vmem [resolvable:$true] %s26_s15 }
   0x4   :  { %s238_s18 = scalar_lea.hbm %s384_s0, 128 }
   0x5   :  { %p239_p0 = scmp.ne.s32.totalorder %s384_s0, %s238_s18  ;;  %p242_p1 = scmp.lt.u32.totalorder %s238_s18, %s384_s0 }
   0x7   :  { %p244_p2 = pnand %p242_p1, %p239_p0 }
   0x9   :  { %247 = shalt.err (!%p244_p2)
}
   0xa   :  { %s248_s23 = scalar_lea.vmem %s18_s13, 128  ;;  %p253_p4 = scmp.lt.s32.totalorder %s18_s13, %s18_s13 }
   0xb   :  { %p249_p3 = scmp.ne.s32.totalorder %s18_s13, %s248_s23  ;;  %p254_p5 = scmp.lt.s32.totalorder %s248_s23, %s248_s23 }
   0xd   :  { %p255_p6 = por %p254_p5, %p253_p4 }
   0xf   :  { %p256_p7 = pnand %p255_p6, %p249_p3 }
  0x11   :  { %259 = shalt.err (!%p256_p7)
}
  0x12   :  { %20 = dma.hbm_to_vmem [thread:$0]  %s384_s0, 128, %s18_s13, [#allocation3]  }
  0x13   :  { %s260_s28 = scalar_lea.hbm %s385_s1, 2048 }
  0x14   :  { %p261_p8 = scmp.ne.s32.totalorder %s385_s1, %s260_s28  ;;  %p264_p9 = scmp.lt.u32.totalorder %s260_s28, %s385_s1 }
  0x16   :  { %p266_p10 = pnand %p264_p9, %p261_p8 }
  0x18   :  { %269 = shalt.err (!%p266_p10)
}
  0x19   :  { %s270_s6 = scalar_lea.vmem %s338_s15, 2048  ;;  %p275_p12 = scmp.lt.s32.totalorder %s338_s15, %s338_s15 }
  0x1a   :  { %p271_p11 = scmp.ne.s32.totalorder %s338_s15, %s270_s6  ;;  %p276_p13 = scmp.lt.s32.totalorder %s270_s6, %s270_s6 }
  0x1c   :  { %p277_p0 = por %p276_p13, %p275_p12 }
  0x1e   :  { %p278_p1 = pnand %p277_p0, %p271_p11 }
  0x20   :  { %281 = shalt.err (!%p278_p1)
}
  0x21   :  { %s312_s0 = smov 128   ;;  %s313_s7 = smov 8  }
  0x22   :  { %32 = dma.hbm_to_vmem [thread:$0]  %s385_s1, 2048, %s338_s15, [#allocation6], %s312_s0, %s312_s0, %s313_s7  }
  0x23   :  { %304 = dma.done.wait [#allocation3], 128  }
  0x24   :  { %305 = vsyncadd [#allocation3], 4294967168 }
  0x25   :  { %306 = dma.done.wait [#allocation6], 2048  }
  0x26   :  { %307 = vsyncadd [#allocation6], 4294965248  ;;  %v314_v0 = vmov 0.0|0.0   ;;  %vm315_vm0 = vmmov 0   ;;  %v316_v1 = vmov 0.0   ;;  %v42_v2 = vld [vmem:[#allocation5] sm:$0xff] }
  0x27   :  { %206 = vmatprep.subr.bf16.mxu0 %v314_v0  ;;  %203 = vmatprep.mubr.msk.f32.mxu0 %vm315_vm0, %v316_v1  ;;  %v43_v3 = vld [vmem:[#allocation5 + $0x8] sm:$0xff]  ;;  %v44_v4 = vld [vmem:[#allocation5 + $0x10] sm:$0xff]  ;;  %v45_v6 = vld [vmem:[#allocation5 + $0x18] sm:$0xff]  ;;  %s317_s11 = smov [#allocation7]  }
  0x28   :  { %v207_v5 = vpack.c.bf16 %v43_v3, %v42_v2  ;;  %v210_v7 = vpack.c.bf16 %v45_v6, %v44_v4  ;;  %v46_v8 = vld [vmem:[#allocation5 + $0x20] sm:$0xff]  ;;  %v47_v9 = vld [vmem:[#allocation5 + $0x28] sm:$0xff]  ;;  %v48_v11 = vld [vmem:[#allocation5 + $0x30] sm:$0xff]  ;;  %s143_s12 = sshll.u32 %s317_s11, 4  ;;  %s144_s12 = int_to_ptr.vmem [resolvable:$true] %s143_s12 }
  0x29   :  { %v213_v10 = vpack.c.bf16 %v47_v9, %v46_v8  ;;  %v49_v12 = vld [vmem:[#allocation5 + $0x38] sm:$0xff]  ;;  %v50_v14 = vld [vmem:[#allocation5 + $0x40] sm:$0xff]  ;;  %v51_v15 = vld [vmem:[#allocation5 + $0x48] sm:$0xff]  ;;  %s282_s13 = scalar_lea.vmem %s144_s12, 128  ;;  %p287_p3 = scmp.lt.s32.totalorder %s144_s12, %s144_s12 }
  0x2a   :  { %208 = vmatpush3.bf16.msra.mxu0 %v207_v5  ;;  %v216_v13 = vpack.c.bf16 %v49_v12, %v48_v11  ;;  %v219_v16 = vpack.c.bf16 %v51_v15, %v50_v14  ;;  %v52_v17 = vld [vmem:[#allocation5 + $0x50] sm:$0xff]  ;;  %v53_v18 = vld [vmem:[#allocation5 + $0x58] sm:$0xff]  ;;  %v54_v20 = vld [vmem:[#allocation5 + $0x60] sm:$0xff]  ;;  %p283_p2 = scmp.ne.s32.totalorder %s144_s12, %s282_s13  ;;  %p288_p4 = scmp.lt.s32.totalorder %s282_s13, %s282_s13 }
  0x2b   :  { %209 = vmatprep.subr.bf16.mxu0 %v314_v0  ;;  %v222_v19 = vpack.c.bf16 %v53_v18, %v52_v17  ;;  %v55_v21 = vld [vmem:[#allocation5 + $0x68] sm:$0xff]  ;;  %v56_v23 = vld [vmem:[#allocation5 + $0x70] sm:$0xff]  ;;  %v57_v24 = vld [vmem:[#allocation5 + $0x78] sm:$0xff] }
  0x2c   :  { %v225_v22 = vpack.c.bf16 %v55_v21, %v54_v20  ;;  %v228_v25 = vpack.c.bf16 %v57_v24, %v56_v23  ;;  %v41_v26 = vld [vmem:[#allocation2] sm:$0xff]  ;;  %p289_p5 = por %p288_p4, %p287_p3 }
  0x2d   :  { %v153_v27 = vld [vmem:[%s386_s2] ss:$0 sm:$0xff] }
  0x2e   :  { %211 = vmatpush3.bf16.msra.mxu0 %v210_v7  ;;  %p290_p6 = pnand %p289_p5, %p283_p2 }
  0x2f   :  { %212 = vmatprep.subr.bf16.mxu0 %v314_v0 }
  0x32   :  { %214 = vmatpush3.bf16.msra.mxu0 %v213_v10 }
  0x33   :  { %215 = vmatprep.subr.bf16.mxu0 %v314_v0 }
  0x36   :  { %217 = vmatpush3.bf16.msra.mxu0 %v216_v13 }
  0x37   :  { %218 = vmatprep.subr.bf16.mxu0 %v314_v0 }
  0x3a   :  { %220 = vmatpush3.bf16.msra.mxu0 %v219_v16 }
  0x3b   :  { %221 = vmatprep.subr.bf16.mxu0 %v314_v0 }
  0x3e   :  { %223 = vmatpush3.bf16.msra.mxu0 %v222_v19 }
  0x3f   :  { %224 = vmatprep.subr.bf16.mxu0 %v314_v0 }
  0x42   :  { %226 = vmatpush3.bf16.msra.mxu0 %v225_v22 }
  0x43   :  { %227 = vmatprep.subr.bf16.mxu0 %v314_v0 }
  0x46   :  { %229 = vmatpush3.bf16.msra.mxu0 %v228_v25 }
  0x49   :  { %204 = vmatmul.mubr.f32.vlgmr.msra.gmra.mrb[0].mxu0 %v41_v26 }
 0x11c   :  { %v131_v28 = vpop.f32.mrb[0].mxu0 }
 0x11d   :  { %v132_v29 = vadd.f32 %v153_v27, %v131_v28  ;;  %v205_v30 = vpop.f32.mrb[1].mxu0 }
 0x11f   :  { %v135_v31 = vmax.f32 %v132_v29, 0.0 }
 0x121   :  { %136 = vst [vmem:[#allocation7] sm:$0xff] %v135_v31 }
 0x122   :  { %293 = shalt.err (!%p290_p6)
}
 0x123   :  { %s294_s16 = scalar_lea.hbm %s387_s3, 128 }
 0x124   :  { %p295_p7 = scmp.ne.s32.totalorder %s387_s3, %s294_s16  ;;  %p298_p8 = scmp.lt.u32.totalorder %s294_s16, %s387_s3 }
 0x126   :  { %p300_p9 = pnand %p298_p8, %p295_p7 }
 0x128   :  { %303 = shalt.err (!%p300_p9)
}
 0x129   :  { %146 = dma.vmem_to_hbm [thread:$0]  %s144_s12, 128, %s387_s3, [#allocation4]  }
 0x12a   :  { %308 = dma.done.wait [#allocation4], 128  }
 0x12b   :  { %309 = vsyncadd [#allocation4], 4294967168 }
 0x12c   :  { %150 = vsyncpa [#allocation3], 1 }
 0x12d   :  { %151 = vsyncpa [#allocation6], 1 }
 0x12e   :  { %152 = vsyncpa [#allocation4], 1 }

</bundles_post_ra>
